<compile_context>
chip_gen: v7x
topology: tpu7x:2x2x1
jax: 0.10.0
libtpu: 0.0.40
codegen_flags: <defaults>
</compile_context>

<pallas_src>
import jax
import jax.numpy as jnp
from jax.experimental import pallas as pl
from jax.experimental.pallas import tpu as pltpu


def conv1x1_relu_kernel(x_ref, w_ref, b_ref, o_ref):
    # x_ref: (Cin, ts)   w_ref: (Cout, Cin)   b_ref: (Cout, 1)   o_ref: (Cout, ts)
    acc = jnp.dot(w_ref[...], x_ref[...], preferred_element_type=jnp.float32)
    acc = acc + b_ref[...]                       # lane-broadcast bias over spatial
    o_ref[...] = jnp.maximum(acc, 0.0).astype(o_ref.dtype)


def _round_up(a, b):
    return ((a + b - 1) // b) * b


def chan_squeeze_forward(x_nchw, weight, bias, *, ts=4096):
    """1x1 conv + ReLU, NCHW in / NCHW out.

    x_nchw: (N, Cin, H, W); weight: (Cout, Cin) (1x1 kernel squeezed); bias: (Cout,)
    """
    N, Cin, H, W = x_nchw.shape
    Cout = weight.shape[0]
    HW = H * W

    # Free reshape (no transpose): (N, Cin, H, W) -> (N, Cin, H*W)
    x_rows = x_nchw.reshape(N, Cin, HW)

    # Lane-dense spatial tiling: tile is a multiple of 128, capped to padded HW.
    ts = min(ts, _round_up(HW, 128))
    hw_padded = _round_up(HW, ts)
    if hw_padded != HW:
        x_rows = jnp.pad(x_rows, ((0, 0), (0, 0), (0, hw_padded - HW)))

    b_col = bias.reshape(Cout, 1)

    out = pl.pallas_call(
        conv1x1_relu_kernel,
        out_shape=jax.ShapeDtypeStruct((N, Cout, hw_padded), x_nchw.dtype),
        grid_spec=pltpu.PrefetchScalarGridSpec(
            num_scalar_prefetch=0,
            grid=(N, hw_padded // ts),
            in_specs=[
                # x tile: batch squeezed, full channel depth, ts spatial lanes
                pl.BlockSpec((None, Cin, ts), lambda n, s: (n, 0, s)),
                # weight: resident across all grid steps (DMA'd once)
                pl.BlockSpec((Cout, Cin), lambda n, s: (0, 0)),
                # bias as a (Cout, 1) column, resident across all grid steps
                pl.BlockSpec((Cout, 1), lambda n, s: (0, 0)),
            ],
            out_specs=pl.BlockSpec((None, Cout, ts), lambda n, s: (n, 0, s)),
        ),
        compiler_params=pltpu.CompilerParams(
            dimension_semantics=("parallel", "parallel")),
    )(x_rows, weight, b_col)

    if hw_padded != HW:
        out = out[:, :, :HW]
    return out.reshape(N, Cout, H, W)


if __name__ == "__main__":
    # Small synthetic shapes consistent with the module (inchannels == outchannels).
    batch, cin, cout, hw = 2, 8, 8, 16

    key = jax.random.PRNGKey(0)
    kx, kw, kb = jax.random.split(key, 3)

    x = jax.random.normal(kx, (batch, cin, hw, hw), dtype=jnp.float32)
    # Conv2d 1x1 weight (Cout, Cin, 1, 1) squeezed to (Cout, Cin).
    weight = jax.random.normal(kw, (cout, cin), dtype=jnp.float32) * 0.1
    bias = jax.random.normal(kb, (cout,), dtype=jnp.float32) * 0.1

    out = chan_squeeze_forward(x, weight, bias)
    jax.block_until_ready(out)

    # Reference in plain JAX (full-precision contraction over channels).
    ref = jnp.einsum("nchw,oc->nohw", x, weight,
                     precision=jax.lax.Precision.HIGHEST)
    ref = ref + bias[None, :, None, None]
    ref = jnp.maximum(ref, 0.0)

    assert out.shape == (batch, cout, hw, hw)
    assert jnp.allclose(out, ref, atol=1e-5, rtol=1e-5)

    print("KERNEL_OK")
</pallas_src>

<mosaic_0001>
module attributes {stable_mosaic.version = 11 : i64} {
  func.func @conv1x1_relu_kernel(%arg0: i32, %arg1: i32, %arg2: memref<1x8x256xf32, #tpu.memory_space<vmem>>, %arg3: memref<8x8xf32, #tpu.memory_space<vmem>>, %arg4: memref<8x1xf32, #tpu.memory_space<vmem>>, %arg5: memref<1x8x256xf32, #tpu.memory_space<vmem>>) attributes {dimension_semantics = [#tpu.dimension_semantics<parallel>, #tpu.dimension_semantics<parallel>], iteration_bounds = array<i64: 2, 1>, scalar_prefetch = 0 : i64, scratch_operands = 0 : i64, tpu.core_type = #tpu.core_type<tc>, window_params = [{transform_indices = @transform_0, window_bounds = array<i64: 1, 8, 256>}, {pipeline_mode = #tpu.pipeline_mode<synchronous>, transform_indices = @transform_1, window_bounds = array<i64: 8, 8>}, {pipeline_mode = #tpu.pipeline_mode<synchronous>, transform_indices = @transform_2, window_bounds = array<i64: 8, 1>}, {transform_indices = @transform_3, window_bounds = array<i64: 1, 8, 256>}]} {
    %c0 = arith.constant 0 : index
    %c0_0 = arith.constant 0 : index
    %0 = vector.load %arg3[%c0, %c0_0] : memref<8x8xf32, #tpu.memory_space<vmem>>, vector<8x8xf32>
    %c0_1 = arith.constant 0 : index
    %c0_2 = arith.constant 0 : index
    %c0_3 = arith.constant 0 : index
    %1 = vector.load %arg2[%c0_1, %c0_2, %c0_3] : memref<1x8x256xf32, #tpu.memory_space<vmem>>, vector<1x8x256xf32>
    %2 = vector.shape_cast %1 : vector<1x8x256xf32> to vector<8x256xf32>
    %cst = arith.constant dense<0.000000e+00> : vector<8x256xf32>
    %3 = tpu.matmul %0, %2, %cst {dimension_numbers = #tpu.dot_dimension_numbers<[1], [0], [0], [1], [0, 0, 1, 1], [], []>} : vector<8x8xf32>, vector<8x256xf32>, vector<8x256xf32> -> vector<8x256xf32>
    %c0_4 = arith.constant 0 : index
    %c0_5 = arith.constant 0 : index
    %4 = vector.load %arg4[%c0_4, %c0_5] : memref<8x1xf32, #tpu.memory_space<vmem>>, vector<8x1xf32>
    %5 = vector.broadcast %4 : vector<8x1xf32> to vector<8x256xf32>
    %6 = arith.addf %3, %5 : vector<8x256xf32>
    %cst_6 = arith.constant 0.000000e+00 : f32
    %7 = vector.broadcast %cst_6 : f32 to vector<8x256xf32>
    %8 = arith.maximumf %6, %7 : vector<8x256xf32>
    %c0_7 = arith.constant 0 : index
    %c0_8 = arith.constant 0 : index
    %c0_9 = arith.constant 0 : index
    %9 = vector.load %arg5[%c0_7, %c0_8, %c0_9] : memref<1x8x256xf32, #tpu.memory_space<vmem>>, vector<1x8x256xf32>
    %10 = vector.shape_cast %9 : vector<1x8x256xf32> to vector<8x256xf32>
    %11 = vector.shape_cast %8 : vector<8x256xf32> to vector<1x8x256xf32>
    tpu.vector_store %arg5[%c0_7, %c0_8, %c0_9], %11 {strides = array<i32>} : memref<1x8x256xf32, #tpu.memory_space<vmem>>, vector<1x8x256xf32>,
    return
  }
  func.func @transform_0(%arg0: i32, %arg1: i32) -> (i32, i32, i32) {
    %c0_i32 = arith.constant 0 : i32
    %c0_i32_0 = arith.constant 0 : i32
    return %arg0, %c0_i32, %arg1 : i32, i32, i32
  }
  func.func @transform_1(%arg0: i32, %arg1: i32) -> (i32, i32) {
    %c0_i32 = arith.constant 0 : i32
    %c0_i32_0 = arith.constant 0 : i32
    %c0_i32_1 = arith.constant 0 : i32
    return %c0_i32, %c0_i32_0 : i32, i32
  }
  func.func @transform_2(%arg0: i32, %arg1: i32) -> (i32, i32) {
    %c0_i32 = arith.constant 0 : i32
    %c0_i32_0 = arith.constant 0 : i32
    %c0_i32_1 = arith.constant 0 : i32
    return %c0_i32, %c0_i32_0 : i32, i32
  }
  func.func @transform_3(%arg0: i32, %arg1: i32) -> (i32, i32, i32) {
    %c0_i32 = arith.constant 0 : i32
    %c0_i32_0 = arith.constant 0 : i32
    return %arg0, %c0_i32, %arg1 : i32, i32, i32
  }
}

</mosaic_0001>

<bundles_post_ra>
// kernel: tpu_custom_call.1
= control target key start
LH: loop header
LB: loop body
LE: loop exit
PB: predicated region body
PF: predicated region fallthrough
CT: control target
= control target key end

     0   :  { %8 = vsyncpa [#allocation3], 0  ;;  %s795_s0 = inlined_call_operand.hbm [shape: f32[2,8,256], index: 0, kind: input, shape index: {}]   ;;  %s796_s1 = inlined_call_operand.vmem [shape: f32[8,8], index: 1, kind: input, shape index: {}]   ;;  %s797_s2 = inlined_call_operand.vmem [shape: f32[8,1], index: 2, kind: input, shape index: {}]   ;;  %s798_s3 = inlined_call_operand.hbm [shape: f32[2,8,256], index: 3, kind: output, shape index: {}]  }
   0x1   :  { %10 = vsyncpa [#allocation3 + $0x1], 0 }
   0x2   :  { %11 = vsyncpa [#allocation4], 0 }
   0x3   :  { %13 = vsyncpa [#allocation4 + $0x1], 0  ;;  %s617_s12 = smov 0   ;;  %s619_s13 = smov 0  }
   0x4   :  { %s621_s14 = smov 0   ;;  %s623_s15 = smov 0  }
   0x5   :  { %s625_s16 = smov 0   ;;  %s627_s17 = smov 0  }
   0x6 LB: > { %s396_s18 = sadd.s32 4294967295, %s591_s17   ;;  %s397_s19 = sadd.s32 4294967294, %s591_s17   ;;  %s591_s17 = sphi %s627_s17, %s19_s17   ;;  %s587_s16 = sphi %s625_s16, %s814_s16   ;;  %s583_s15 = sphi %s623_s15, %s813_s15   ;;  %s579_s14 = sphi %s621_s14, %s812_s14   ;;  %s575_s13 = sphi %s619_s13, %s811_s13   ;;  %s571_s12 = sphi %s617_s12, %s810_s12  }
   0x7   : > { %s31_s20 = sadd.s32 1, %s587_s16  ;;  %s40_s21 = sadd.s32 1, %s579_s14 }
   0x8   : > { %p33_p0 = scmp.ge.s32.totalorder %s31_s20, 2  ;;  %p47_p1 = scmp.ne.s32.totalorder %s579_s14, %s575_s13 }
   0x9   : > { %p48_p2 = scmp.eq.s32.totalorder %s591_s17, 0  ;;  %p53_p3 = scmp.ne.s32.totalorder %s575_s13, %s571_s12 }
   0xa   : > { %s816_s20 = smov (%p33_p0, %s31_s20), 0  ;;  %p54_p5 = scmp.eq.s32.totalorder %s396_s18, 0 }
   0xb   : > { %p658_p4 = por %p48_p2, %p47_p1  ;;  %s35_s23 = ssub.s32 %s587_s16, %s816_s20 }
   0xc   : > { %p121_p6 = scmp.eq.s32.totalorder %s396_s18, 1  ;;  %p38_p7 = scmp.eq.s32.totalorder %s35_s23, 0 }
   0xd   : > { %p664_p8 = por %p54_p5, %p53_p3  ;;  %p127_p10 = scmp.eq.s32.totalorder %s397_s19, 1 }
   0xe   : > { %p668_p9 = por %p121_p6, %p47_p1  ;;  %p426_p13 = scmp.lt.s32.totalorder %s591_s17, 2 }
   0xf   : > { %s673_s26 = scalar_select %p38_p7, %s579_s14, %s40_s21  }
  0x10   : > { %s802_s25 = scalar_select %p668_p9, 1, 0 }
  0x11   : > { %p675_p11 = por %p127_p10, %p53_p3  ;;  %s153_s28 = sand.u32 1, %s579_s14  }
  0x12   : > { %s400_s29 = sshll.u32 %s153_s28, 4  ;;  %s412_s30 = sshll.u32 %s587_s16, 8 }
  0x13   : > { %s803_s27 = scalar_select %p675_p11, 1, 0 }
  0x14   : > { %s686_s6 = scalar_lea.hbm %s795_s0, %s412_s30  ;;  %s157_s7 = scalar_lea.vmem [#allocation2], %s400_s29 }
  0x15   : > { %s167_s8 = sshll.u32 %s157_s7, 4  ;;  %p692_p0 = pnand %p426_p13, %p658_p4  ;;  %s688_s8 = int_to_ptr.vmem [resolvable:$true] %s167_s8 }
  0x16   : > { %s154_s10 = scalar_lea.sflag [#allocation3], %s153_s28  ;;  %s479_s11 = scalar_lea.hbm %s686_s6, 256 }
  0x17   : > { %p480_p3 = scmp.ne.s32.totalorder %s686_s6, %s479_s11  ;;  %p481_p5 = pneg %p692_p0 }
  0x18   : > { %s484_s21 = scalar_lea.hbm %s795_s0, 512  ;;  %p485_p4 = scmp.lt.u32.totalorder %s686_s6, %s795_s0 }
  0x19   : > { %p482_p6 = pnand %p481_p5, %p480_p3  ;;  %p486_p10 = scmp.lt.u32.totalorder %s484_s21, %s479_s11 }
  0x1a   : > { %p488_p12 = scmp.lt.u32.totalorder %s479_s11, %s686_s6 }
  0x1b   : > { %p483_p7 = pneg %p482_p6  ;;  %p487_p13 = por %p486_p10, %p485_p4 }
  0x1d   : > { %p489_p1 = por %p488_p12, %p487_p13 }
  0x1f   : > { %p490_p2 = pnand %p489_p1, %p483_p7 }
  0x21   : > { %493 = shalt.err (!%p490_p2)
}
  0x22   : > { %s494_s28 = scalar_lea.vmem %s688_s8, 256  ;;  %s593_s29 = smov [#allocation2]  }
  0x23   : > { %p495_p3 = scmp.ne.s32.totalorder %s688_s8, %s494_s28  ;;  %s499_s30 = sshll.u32 %s593_s29, 4  ;;  %s500_s30 = int_to_ptr.vmem [resolvable:$false] %s499_s30 }
  0x24   : > { %s501_s4 = scalar_lea.vmem %s500_s30, 512  ;;  %p502_p9 = scmp.lt.s32.totalorder %s688_s8, %s500_s30 }
  0x25   : > { %p497_p6 = pnand %p495_p3, %p481_p5  ;;  %p503_p4 = scmp.lt.s32.totalorder %s501_s4, %s494_s28 }
  0x27   : > { %p498_p11 = pneg %p497_p6  ;;  %p504_p10 = por %p503_p4, %p502_p9 }
  0x29   : > { %p505_p12 = pnand %p504_p10, %p498_p11 }
  0x2b   : > { %508 = shalt.err (!%p505_p12)
}
  0x2c   : > { %421 = dma.hbm_to_vmem [thread:$0]  (!%p692_p0), %s686_s6, 256, %s688_s8, %s154_s10  }
  0x2d   : > { %p805_p1 = scmp.lt.s32.totalorder %s591_s17, 3  ;;  %p806_p2 = scmp.ge.s32.totalorder %s591_s17, 1 }
  0x2f   : > { %p173_p5 = pnand %p806_p2, %p805_p1 }
  0x30   : > { %s728_s5 = sand.u32 (!%p173_p5), 1, %s575_s13  }
  0x31   : > { %176 = sbr.rel (%p173_p5) target bundleno = 292 (0x124), region = 32  ;;  %s404_s7 = sshll.u32 (!%p173_p5), %s728_s5, 4 }
  0x32   : > { %s179_s11 = scalar_lea.sflag (!%p173_p5), [#allocation3], %s728_s5  ;;  %s182_s18 = scalar_lea.vmem (!%p173_p5), [#allocation2], %s404_s7 }
  0x38   : > { %562 = dma.done.wait (%p664_p8), %s179_s11, 256  }
  0x39   : > { %564 = vsyncadd (%p664_p8), %s179_s11, 4294967040  ;;  %v594_v0 = vmov 0.0   ;;  %v595_v1 = vmov 0   ;;  %v209_v2 = vld [vmem:[%s182_s18 + $0x8] sm:$0xff]  ;;  %v208_v3 = vld [vmem:[%s182_s18] sm:$0xff]  ;;  %vm216_vm0 = vcmask 64512  }
  0x3a   : > { %284 = vmatprep.mubr.f32.mxu0 %v594_v0  ;;  %478 = vset.pattern.permute.xlu0 %v595_v1  ;;  %v207_v4 = vld [vmem:[%s796_s1] sm:$0xff]  ;;  %s413_s24 = sshll.u32 %s583_s15, 8  ;;  %s204_s19 = scalar_lea.vmem [#allocation5], %s404_s7 }
  0x3b   : > { %220 = vmatprep.subr.mxu0 %v209_v2  ;;  %v210_v5 = vld [vmem:[%s797_s2] sm:$0xff]  ;;  %s312_s21 = sshll.u32 %s204_s19, 4  ;;  %s746_s28 = scalar_lea.hbm %s798_s3, %s413_s24  ;;  %s748_s21 = int_to_ptr.vmem [resolvable:$true] %s312_s21 }
  0x3c   : > { %221 = vmatpush1.msra.mxu0 %v208_v3  ;;  %213 = vperm.xlu0 %478, %v210_v5   ;;  %s296_s29 = scalar_lea.sflag [#allocation4], %s728_s5  ;;  %s509_s30 = scalar_lea.vmem %s748_s21, 256 }
  0x3d   : > { %406 = vmatmul.mubr.msk.f32.vlgmr.msra.gmra.mrb[0].mxu0 %vm216_vm0, %v207_v4  ;;  %p510_p8 = scmp.ne.s32.totalorder %s748_s21, %s509_s30  ;;  %p807_p9 = scmp.ne.s32.totalorder %s802_s25, 0 }
  0x3e   : > { %s596_s15 = smov [#allocation5]  }
  0x3f   : > { %p511_p11 = pnand %p510_p8, %p807_p9  ;;  %s513_s4 = sshll.u32 %s596_s15, 4  ;;  %s514_s4 = int_to_ptr.vmem [resolvable:$false] %s513_s4 }
  0x40   : > { %s515_s7 = scalar_lea.vmem %s514_s4, 512  ;;  %p516_p7 = scmp.lt.s32.totalorder %s748_s21, %s514_s4 }
  0x41   : > { %p512_p0 = pneg %p511_p11  ;;  %p517_p13 = scmp.lt.s32.totalorder %s515_s7, %s509_s30 }
  0x43   : > { %p518_p3 = por %p517_p13, %p516_p7 }
  0x45   : > { %p519_p6 = pnand %p518_p3, %p512_p0 }
  0xbb   : > { %v214_v6 = vpop.permute.xlu0 %213 }
 0x110   : > { %v286_v7 = vpop.f32.mrb[0].mxu0 }
 0x111   : > { %v287_v8 = vadd.f32 %v286_v7, %v214_v6  ;;  %v288_v9 = vpop.f32.mrb[1].mxu0 }
 0x112   : > { %v289_v10 = vadd.f32 %v288_v9, %v214_v6 }
 0x113   : > { %v291_v11 = vmax.f32 %v287_v8, 0.0 }
 0x114   : > { %v292_v12 = vmax.f32 %v289_v10, 0.0 }
 0x115   : > { %293 = vst [vmem:[%s204_s19] sm:$0xff] %v291_v11 }
 0x116   : > { %294 = vst [vmem:[%s204_s19 + $0x8] sm:$0xff] %v292_v12 }
 0x117   : > { %522 = shalt.err (!%p519_p6)
}
 0x118   : > { %s523_s5 = scalar_lea.hbm %s746_s28, 256  ;;  %s527_s6 = scalar_lea.hbm %s798_s3, 512 }
 0x119   : > { %p524_p4 = scmp.ne.s32.totalorder %s746_s28, %s523_s5  ;;  %p528_p1 = scmp.lt.u32.totalorder %s746_s28, %s798_s3 }
 0x11a   : > { %p529_p2 = scmp.lt.u32.totalorder %s527_s6, %s523_s5  ;;  %p531_p8 = scmp.lt.u32.totalorder %s523_s5, %s746_s28 }
 0x11b   : > { %p525_p10 = pnand %p524_p4, %p807_p9 }
 0x11c   : > { %p530_p5 = por %p529_p2, %p528_p1 }
 0x11d   : > { %p526_p12 = pneg %p525_p10 }
 0x11e   : > { %p532_p11 = por %p531_p8, %p530_p5 }
 0x120   : > { %p533_p0 = pnand %p532_p11, %p526_p12 }
 0x122   : > { %536 = shalt.err (!%p533_p0)
}
 0x123   : > { %416 = dma.vmem_to_hbm [thread:$0]  (%p807_p9), %s748_s21, 256, %s746_s28, %s296_s29  }
 0x124 PF: > { %s324_s10 = sand.u32 1, %s571_s12   ;;  %p808_p7 = scmp.ne.s32.totalorder %s803_s27, 0 }
 0x125   : > { %p809_p13 = scmp.ge.s32.totalorder %s591_s17, 2  ;;  %s325_s24 = scalar_lea.sflag [#allocation4], %s324_s10 }
 0x127   : > { %p423_p3 = pnand %p809_p13, %p808_p7 }
 0x129   : > { %566 = dma.done.wait (!%p423_p3), %s325_s24, 256  }
 0x12a   : > { %568 = vsyncadd (!%p423_p3), %s325_s24, 4294967040  ;;  %s19_s17 = sadd.s32 1, %s591_s17   ;;  %s810_s12 = smov %s575_s13 }
 0x12b   : > { %p16_p6 = scmp.ge.s32.totalorder %s19_s17, 4   ;;  %s811_s13 = smov %s579_s14 }
 0x12c   : > { %s812_s14 = smov %s673_s26  ;;  %s813_s15 = smov %s587_s16 }
 0x12d   : > { %s814_s16 = smov %s816_s20  ;;  %18 = sbr.rel (!%p16_p6) target bundleno = 6 (0x6), region = 77 }
 0x134   :  { %330 = vsyncpa [#allocation3], 1 }
 0x135   :  { %332 = vsyncpa [#allocation3 + $0x1], 1 }
 0x136   :  { %333 = vsyncpa [#allocation4], 1 }
 0x137   :  { %335 = vsyncpa [#allocation4 + $0x1], 1 }

</bundles_post_ra>
